<compile_context>
chip_gen: v6e
topology: v6e:2x2x1
jax: 0.10.0
libtpu: 0.0.40
codegen_flags: <defaults>
</compile_context>

<pallas_src>
import jax
import jax.numpy as jnp
from jax.experimental import pallas as pl
from jax.experimental.pallas import tpu as pltpu


def _net_kernel(xt_ref, w1_ref, b1_ref, w2_ref, b2_ref, out_ref):
    # xt: (IN, TB) batch-on-lanes; w1: (H, IN); b1: (H, 1); w2: (1, H); b2: (1, 1)
    # fc1 on the MXU, f32 accumulate -> h^T (H, TB)
    h = jnp.dot(w1_ref[...], xt_ref[...], preferred_element_type=jnp.float32)
    # bias + ReLU on the VPU (lane-broadcast of the (H,1) bias column).
    h = jnp.maximum(h + b1_ref[...], 0.0)
    # fc2 as a (1,H) @ (H,TB) MXU matmul -> lane-dense (1, TB) result.
    o = jnp.dot(w2_ref[...], h, preferred_element_type=jnp.float32) + b2_ref[...]
    # sigmoid = 1 / (1 + exp(-o)); exp runs on the EUP, exact division for accuracy.
    out_ref[...] = (1.0 / (1.0 + jnp.exp(-o))).astype(out_ref.dtype)


def net_forward(x, fc1_w, fc1_b, fc2_w, fc2_b, *, tb=None):
    """x: (B, IN); fc1_w: (H, IN); fc1_b: (H,); fc2_w: (1, H); fc2_b: (1,).

    Weights use the torch.nn.Linear layout.  Returns (B, 1) float32.
    tb=None -> single grid step (best on v5e/v6e); tb=ceil(B/2) rounded to a
    multiple of 128 -> 2 parallel blocks (one per v7x TensorCore).
    """
    B, IN = x.shape
    H = fc1_w.shape[0]
    if tb is None:
        tb = B                      # one block covering the full batch
    n_blocks = pl.cdiv(B, tb)

    xt = x.astype(jnp.float32).T                    # (IN, B): batch on lanes
    w1 = fc1_w.astype(jnp.float32)                  # (H, IN)
    b1 = fc1_b.astype(jnp.float32).reshape(H, 1)    # (H, 1)
    w2 = fc2_w.astype(jnp.float32)                  # (1, H)
    b2 = fc2_b.astype(jnp.float32).reshape(1, 1)    # (1, 1)

    flops = 2 * B * IN * H + 2 * B * H
    bytes_accessed = 4 * (B * IN + B + H * IN + H + H + 1)

    out = pl.pallas_call(
        _net_kernel,
        out_shape=jax.ShapeDtypeStruct((1, B), jnp.float32),
        grid=(n_blocks,),
        in_specs=[
            # x^T: one (IN, tb) lane-tile per step -- pipelined against compute.
            pl.BlockSpec((IN, tb), lambda i: (0, i)),
            # Parameters: constant index_maps -> VMEM-resident across steps.
            pl.BlockSpec((H, IN), lambda i: (0, 0)),
            pl.BlockSpec((H, 1), lambda i: (0, 0)),
            pl.BlockSpec((1, H), lambda i: (0, 0)),
            pl.BlockSpec((1, 1), lambda i: (0, 0)),
        ],
        # Lane-dense output block; ragged last block -> masked OOB stores.
        out_specs=pl.BlockSpec((1, tb), lambda i: (0, i)),
        compiler_params=pltpu.CompilerParams(
            dimension_semantics=("parallel",)),
        cost_estimate=pl.CostEstimate(
            flops=flops, transcendentals=B, bytes_accessed=bytes_accessed),
    )(xt, w1, b1, w2, b2)

    # (1, B) -> (B, 1): pure reshape, no data movement.
    return out.reshape(B, 1)


def reference_forward(x, fc1_w, fc1_b, fc2_w, fc2_b):
    h = jnp.maximum(x @ fc1_w.T + fc1_b, 0.0)
    o = h @ fc2_w.T + fc2_b
    return 1.0 / (1.0 + jnp.exp(-o))


if __name__ == "__main__":
    hidden_size = 30
    input_size = 16     # small synthetic feature count
    batch = 1000        # not a multiple of 128 -> exercises the ragged-block path

    key = jax.random.PRNGKey(0)
    kx, k1, k2, k3, k4 = jax.random.split(key, 5)

    x = jax.random.normal(kx, (batch, input_size), dtype=jnp.float32)

    # Deterministic torch.nn.Linear-style uniform init.
    bound1 = 1.0 / (input_size ** 0.5)
    fc1_w = jax.random.uniform(k1, (hidden_size, input_size), dtype=jnp.float32,
                               minval=-bound1, maxval=bound1)
    fc1_b = jax.random.uniform(k2, (hidden_size,), dtype=jnp.float32,
                               minval=-bound1, maxval=bound1)
    bound2 = 1.0 / (hidden_size ** 0.5)
    fc2_w = jax.random.uniform(k3, (1, hidden_size), dtype=jnp.float32,
                               minval=-bound2, maxval=bound2)
    fc2_b = jax.random.uniform(k4, (1,), dtype=jnp.float32,
                               minval=-bound2, maxval=bound2)

    ref = reference_forward(x, fc1_w, fc1_b, fc2_w, fc2_b)

    # Single grid step (best on v5e/v6e: everything resident in VMEM, 1 launch).
    out1 = jax.block_until_ready(net_forward(x, fc1_w, fc1_b, fc2_w, fc2_b))
    # Two "parallel" blocks (one per v7x TensorCore); ragged last block handled
    # by Pallas' masked out-of-bounds stores -- no wrapper padding or slicing.
    out2 = jax.block_until_ready(net_forward(x, fc1_w, fc1_b, fc2_w, fc2_b, tb=512))

    assert out1.shape == (batch, 1) and out2.shape == (batch, 1)
    assert jnp.allclose(out1, ref, atol=2e-3, rtol=2e-3)
    assert jnp.allclose(out2, ref, atol=2e-3, rtol=2e-3)

    print("KERNEL_OK")
</pallas_src>

<mosaic_0001>
module attributes {stable_mosaic.version = 11 : i64} {
  func.func @_net_kernel(%arg0: i32, %arg1: memref<16x1000xf32, #tpu.memory_space<vmem>>, %arg2: memref<30x16xf32, #tpu.memory_space<vmem>>, %arg3: memref<30x1xf32, #tpu.memory_space<vmem>>, %arg4: memref<1x30xf32, #tpu.memory_space<vmem>>, %arg5: memref<1x1xf32, #tpu.memory_space<vmem>>, %arg6: memref<1x1000xf32, #tpu.memory_space<vmem>>) attributes {dimension_semantics = [#tpu.dimension_semantics<parallel>], iteration_bounds = array<i64: 1>, scalar_prefetch = 0 : i64, scratch_operands = 0 : i64, tpu.core_type = #tpu.core_type<tc>, window_params = [{transform_indices = @transform_0, window_bounds = array<i64: 16, 1000>}, {pipeline_mode = #tpu.pipeline_mode<synchronous>, transform_indices = @transform_1, window_bounds = array<i64: 30, 16>}, {pipeline_mode = #tpu.pipeline_mode<synchronous>, transform_indices = @transform_2, window_bounds = array<i64: 30, 1>}, {pipeline_mode = #tpu.pipeline_mode<synchronous>, transform_indices = @transform_3, window_bounds = array<i64: 1, 30>}, {pipeline_mode = #tpu.pipeline_mode<synchronous>, transform_indices = @transform_4, window_bounds = array<i64: 1, 1>}, {transform_indices = @transform_5, window_bounds = array<i64: 1, 1000>}]} {
    %c0 = arith.constant 0 : index
    %c0_0 = arith.constant 0 : index
    %0 = vector.load %arg2[%c0, %c0_0] : memref<30x16xf32, #tpu.memory_space<vmem>>, vector<30x16xf32>
    %c0_1 = arith.constant 0 : index
    %c0_2 = arith.constant 0 : index
    %1 = vector.load %arg1[%c0_1, %c0_2] : memref<16x1000xf32, #tpu.memory_space<vmem>>, vector<16x1000xf32>
    %cst = arith.constant dense<0.000000e+00> : vector<30x1000xf32>
    %2 = tpu.matmul %0, %1, %cst {dimension_numbers = #tpu.dot_dimension_numbers<[1], [0], [0], [1], [0, 0, 1, 1], [], []>} : vector<30x16xf32>, vector<16x1000xf32>, vector<30x1000xf32> -> vector<30x1000xf32>
    %c0_3 = arith.constant 0 : index
    %c0_4 = arith.constant 0 : index
    %3 = vector.load %arg3[%c0_3, %c0_4] : memref<30x1xf32, #tpu.memory_space<vmem>>, vector<30x1xf32>
    %4 = vector.broadcast %3 : vector<30x1xf32> to vector<30x1000xf32>
    %5 = arith.addf %2, %4 : vector<30x1000xf32>
    %cst_5 = arith.constant 0.000000e+00 : f32
    %6 = vector.broadcast %cst_5 : f32 to vector<30x1000xf32>
    %7 = arith.maximumf %5, %6 : vector<30x1000xf32>
    %c0_6 = arith.constant 0 : index
    %c0_7 = arith.constant 0 : index
    %8 = vector.load %arg4[%c0_6, %c0_7] : memref<1x30xf32, #tpu.memory_space<vmem>>, vector<1x30xf32>
    %cst_8 = arith.constant dense<0.000000e+00> : vector<1x1000xf32>
    %9 = tpu.matmul %8, %7, %cst_8 {dimension_numbers = #tpu.dot_dimension_numbers<[1], [0], [0], [1], [0, 0, 1, 1], [], []>} : vector<1x30xf32>, vector<30x1000xf32>, vector<1x1000xf32> -> vector<1x1000xf32>
    %c0_9 = arith.constant 0 : index
    %c0_10 = arith.constant 0 : index
    %10 = vector.load %arg5[%c0_9, %c0_10] : memref<1x1xf32, #tpu.memory_space<vmem>>, vector<1x1xf32>
    %11 = vector.broadcast %10 : vector<1x1xf32> to vector<1x1000xf32>
    %12 = arith.addf %9, %11 : vector<1x1000xf32>
    %cst_11 = arith.constant 0.000000e+00 : f32
    %13 = vector.broadcast %cst_11 : f32 to vector<1x1000xf32>
    %14 = arith.subf %13, %12 : vector<1x1000xf32>
    %15 = math.exp %14 : vector<1x1000xf32>
    %cst_12 = arith.constant 1.000000e+00 : f32
    %16 = vector.broadcast %cst_12 : f32 to vector<1x1000xf32>
    %17 = arith.addf %16, %15 : vector<1x1000xf32>
    %cst_13 = arith.constant 1.000000e+00 : f32
    %18 = vector.broadcast %cst_13 : f32 to vector<1x1000xf32>
    %19 = arith.divf %18, %17 : vector<1x1000xf32>
    %c0_14 = arith.constant 0 : index
    %c0_15 = arith.constant 0 : index
    %20 = vector.load %arg6[%c0_14, %c0_15] : memref<1x1000xf32, #tpu.memory_space<vmem>>, vector<1x1000xf32>
    tpu.vector_store %arg6[%c0_14, %c0_15], %19 {strides = array<i32>} : memref<1x1000xf32, #tpu.memory_space<vmem>>, vector<1x1000xf32>,
    return
  }
  func.func @transform_0(%arg0: i32) -> (i32, i32) {
    %c0_i32 = arith.constant 0 : i32
    %c0_i32_0 = arith.constant 0 : i32
    return %c0_i32, %arg0 : i32, i32
  }
  func.func @transform_1(%arg0: i32) -> (i32, i32) {
    %c0_i32 = arith.constant 0 : i32
    %c0_i32_0 = arith.constant 0 : i32
    %c0_i32_1 = arith.constant 0 : i32
    return %c0_i32, %c0_i32_0 : i32, i32
  }
  func.func @transform_2(%arg0: i32) -> (i32, i32) {
    %c0_i32 = arith.constant 0 : i32
    %c0_i32_0 = arith.constant 0 : i32
    %c0_i32_1 = arith.constant 0 : i32
    return %c0_i32, %c0_i32_0 : i32, i32
  }
  func.func @transform_3(%arg0: i32) -> (i32, i32) {
    %c0_i32 = arith.constant 0 : i32
    %c0_i32_0 = arith.constant 0 : i32
    %c0_i32_1 = arith.constant 0 : i32
    return %c0_i32, %c0_i32_0 : i32, i32
  }
  func.func @transform_4(%arg0: i32) -> (i32, i32) {
    %c0_i32 = arith.constant 0 : i32
    %c0_i32_0 = arith.constant 0 : i32
    %c0_i32_1 = arith.constant 0 : i32
    return %c0_i32, %c0_i32_0 : i32, i32
  }
  func.func @transform_5(%arg0: i32) -> (i32, i32) {
    %c0_i32 = arith.constant 0 : i32
    %c0_i32_0 = arith.constant 0 : i32
    return %c0_i32, %arg0 : i32, i32
  }
}

</mosaic_0001>

<bundles_post_ra>
// kernel: tpu_custom_call.1
= control target key start
LH: loop header
LB: loop body
LE: loop exit
PB: predicated region body
PF: predicated region fallthrough
CT: control target
= control target key end

     0   :  { %s1230_s0 = inlined_call_operand.hbm [shape: f32[16,1000], index: 0, kind: input, shape index: {}]   ;;  %s1231_s1 = inlined_call_operand.vmem [shape: f32[30,16], index: 1, kind: input, shape index: {}]   ;;  %s1232_s2 = inlined_call_operand.vmem [shape: f32[30,1], index: 2, kind: input, shape index: {}]   ;;  %s1233_s3 = inlined_call_operand.vmem [shape: f32[1,30], index: 3, kind: input, shape index: {}]   ;;  %s1234_s4 = inlined_call_operand.<no memory space> [shape: f32[1,1], index: 4, kind: input, shape index: {}]   ;;  %s1235_s5 = inlined_call_operand.hbm [shape: f32[1,1000], index: 5, kind: output, shape index: {}]  }
   0x1   :  { %v10_v0 = vstv %s1234_s4 }
   0x2   :  { %11 = vst [vmem:[#allocation2] sm:$0x1] %v10_v0 }
   0x3   :  { %12 = vsyncpa [#allocation4], 0 }
   0x4   :  { %13 = vsyncpa [#allocation5], 0  ;;  %s1045_s20 = smov [#allocation3]  }
   0x5   :  { %s19_s21 = sshll.u32 %s1045_s20, 4  ;;  %s20_s21 = int_to_ptr.vmem [resolvable:$true] %s19_s21 }
   0x6   :  { %s1009_s22 = scalar_lea.vmem %s20_s21, 2048  ;;  %p1014_p1 = scmp.lt.s32.totalorder %s20_s21, %s20_s21 }
   0x7   :  { %p1010_p0 = scmp.ne.s32.totalorder %s20_s21, %s1009_s22  ;;  %p1015_p2 = scmp.lt.s32.totalorder %s1009_s22, %s1009_s22 }
   0x9   :  { %p1016_p3 = por %p1015_p2, %p1014_p1 }
   0xb   :  { %p1017_p4 = pnand %p1016_p3, %p1010_p0 }
   0xd   :  { %1020 = shalt.err (!%p1017_p4)
}
   0xe   :  { %s1046_s23 = smov 1024   ;;  %s1047_s24 = smov 64  }
   0xf   :  { %25 = dma.hbm_to_vmem [thread:$0]  %s1230_s0, 2048, %s20_s21, [#allocation4], %s1046_s23, %s1046_s23, %s1047_s24  }
  0x10   :  { %1041 = dma.done.wait [#allocation4], 2048  }
  0x11   :  { %1042 = vsyncadd [#allocation4], 4294965248  ;;  %v1048_v1 = vmov 0.0   ;;  %v1049_v2 = vmov 0   ;;  %v50_v3 = vld [vmem:[#allocation3 + $0x48] sm:$0xff]  ;;  %v52_v4 = vld [vmem:[#allocation3 + $0x58] sm:$0xff] }
  0x12   :  { %158 = vmatprep.mubr.f32.mxu0 %v1048_v1  ;;  %247 = vmatprep.mubr.f32.mxu1 %v1048_v1  ;;  %v49_v5 = vld [vmem:[#allocation3 + $0x40] sm:$0xff]  ;;  %v51_v6 = vld [vmem:[#allocation3 + $0x50] sm:$0xff]  ;;  %v42_v7 = vld [vmem:[#allocation3 + $0x8] sm:$0xff]  ;;  %vm81_vm0 = vcmask 130048   ;;  %vm497_vm1 = vcmask 1045504   ;;  %vm493_vm2 = vcmask 244736  }
  0x13   :  { %968 = vset.pattern.permute.xlu1 %v1049_v2  ;;  %967 = vset.pattern.permute.xlu0 %v1049_v2  ;;  %v44_v8 = vld [vmem:[#allocation3 + $0x18] sm:$0xff]  ;;  %v41_v9 = vld [vmem:[#allocation3] sm:$0xff]  ;;  %v43_v10 = vld [vmem:[#allocation3 + $0x10] sm:$0xff] }
  0x14   :  { %122 = vmatprep.subr.mxu0 %v50_v3  ;;  %211 = vmatprep.subr.mxu1 %v52_v4  ;;  %v37_v11 = vld [vmem:[%s1231_s1] sm:$0xff]  ;;  %v54_v12 = vld [vmem:[#allocation3 + $0x68] sm:$0xff]  ;;  %v55_v15 = vld [vmem:[#allocation3 + $0x70] sm:$0xff] }
  0x15   :  { %123 = vmatpush1.msra.mxu0 %v49_v5  ;;  %212 = vmatpush1.msra.mxu1 %v51_v6  ;;  %v56_v13 = vld [vmem:[#allocation3 + $0x78] sm:$0xff]  ;;  %v53_v14 = vld [vmem:[#allocation3 + $0x60] sm:$0xff]  ;;  %v46_v17 = vld [vmem:[#allocation3 + $0x28] sm:$0xff] }
  0x16   :  { %124 = vmatprep.subr.mxu0 %v42_v7  ;;  %213 = vmatprep.subr.mxu1 %v44_v8  ;;  %v38_v16 = vld [vmem:[%s1231_s1 + $0x8] sm:$0xff]  ;;  %v48_v18 = vld [vmem:[#allocation3 + $0x38] sm:$0xff]  ;;  %v47_v20 = vld [vmem:[#allocation3 + $0x30] sm:$0xff] }
  0x17   :  { %125 = vmatpush1.msra.mxu0 %v41_v9  ;;  %214 = vmatpush1.msra.mxu1 %v43_v10  ;;  %v45_v19 = vld [vmem:[#allocation3 + $0x20] sm:$0xff]  ;;  %v39_v21 = vld [vmem:[%s1231_s1 + $0x10] sm:$0xff]  ;;  %v60_v23 = vld [vmem:[%s1232_s2 + $0x18] sm:$0x3f] }
  0x18   :  { %932 = vmatmul.mubr.msk.f32.vlgmr.msra.gmra.mxu0 %vm81_vm0, %v37_v11  ;;  %936 = vmatmul.mubr.msk.f32.vlgmr.msra.gmra.mxu1 %vm81_vm0, %v37_v11  ;;  %v58_v22 = vld [vmem:[%s1232_s2 + $0x8] sm:$0xff]  ;;  %v40_v24 = vld [vmem:[%s1231_s1 + $0x18] sm:$0x3f]  ;;  %v57_v25 = vld [vmem:[%s1232_s2] sm:$0xff] }
  0x19   :  { %300 = vmatprep.subr.mxu0 %v54_v12  ;;  %389 = vmatprep.subr.mxu1 %v56_v13  ;;  %v59_v26 = vld [vmem:[%s1232_s2 + $0x10] sm:$0xff]  ;;  %v483_v27 = vld [vmem:[#allocation2] sm:$0x1] }
  0x1a   :  { %301 = vmatpush1.msra.mxu0 %v53_v14  ;;  %390 = vmatpush1.msra.mxu1 %v55_v15 }
  0x1b   :  { %164 = vmatprep.mubr.f32.mxu0 %v1048_v1  ;;  %253 = vmatprep.mubr.f32.mxu1 %v1048_v1 }
  0x1c   :  { %933 = vmatmul.mubr.msk.f32.gmra.mxu0 %vm81_vm0, %v38_v16  ;;  %937 = vmatmul.mubr.msk.f32.gmra.mxu1 %vm81_vm0, %v38_v16 }
  0x1d   :  { %170 = vmatprep.mubr.f32.mxu0 %v1048_v1  ;;  %259 = vmatprep.mubr.f32.mxu1 %v1048_v1 }
  0x1e   :  { %302 = vmatprep.subr.mxu0 %v46_v17  ;;  %391 = vmatprep.subr.mxu1 %v48_v18 }
  0x1f   :  { %303 = vmatpush1.msra.mxu0 %v45_v19  ;;  %392 = vmatpush1.msra.mxu1 %v47_v20 }
  0x20   :  { %934 = vmatmul.mubr.msk.f32.gmra.mxu0 %vm81_vm0, %v39_v21  ;;  %938 = vmatmul.mubr.msk.f32.gmra.mxu1 %vm81_vm0, %v39_v21 }
  0x21   :  { %176 = vmatprep.mubr.f32.mxu0 %v1048_v1  ;;  %265 = vmatprep.mubr.f32.mxu1 %v1048_v1 }
  0x22   :  { %68 = vperm.xlu1 %968, %v58_v22   ;;  %78 = vperm.xlu0 %967, %v60_v23  }
  0x24   :  { %935 = vmatmul.mubr.msk.f32.gmra.mxu0 %vm81_vm0, %v40_v24  ;;  %939 = vmatmul.mubr.msk.f32.gmra.mxu1 %vm81_vm0, %v40_v24 }
  0x25   :  { %336 = vmatprep.mubr.f32.mxu0 %v1048_v1  ;;  %425 = vmatprep.mubr.f32.mxu1 %v1048_v1 }
  0x26   :  { %63 = vperm.xlu1 %968, %v57_v25   ;;  %73 = vperm.xlu0 %967, %v59_v26  }
  0x28   :  { %940 = vmatmul.mubr.msk.f32.vlgmr.msra.gmra.mxu0 %vm81_vm0, %v37_v11  ;;  %944 = vmatmul.mubr.msk.f32.vlgmr.msra.gmra.mxu1 %vm81_vm0, %v37_v11 }
  0x29   :  { %342 = vmatprep.mubr.f32.mxu0 %v1048_v1  ;;  %431 = vmatprep.mubr.f32.mxu1 %v1048_v1 }
  0x2a   :  { %486 = vperm.xlu0 %967, %v483_v27   ;;  %v1185_v27 = vld [vmem:[%s1233_s3] sm:$0x1]  ;;  %s1051_s3 = smov [#allocation6]  }
  0x2b   :  { %s923_s16 = sshll.u32 %s1051_s3, 4  ;;  %s924_s16 = int_to_ptr.vmem [resolvable:$true] %s923_s16 }
  0x2c   :  { %941 = vmatmul.mubr.msk.f32.gmra.mxu0 %vm81_vm0, %v38_v16  ;;  %945 = vmatmul.mubr.msk.f32.gmra.mxu1 %vm81_vm0, %v38_v16  ;;  %s1021_s17 = scalar_lea.vmem %s924_s16, 128  ;;  %p1026_p6 = scmp.lt.s32.totalorder %s924_s16, %s924_s16 }
  0x2d   :  { %348 = vmatprep.mubr.f32.mxu0 %v1048_v1  ;;  %437 = vmatprep.mubr.f32.mxu1 %v1048_v1  ;;  %p1022_p5 = scmp.ne.s32.totalorder %s924_s16, %s1021_s17  ;;  %p1027_p7 = scmp.lt.s32.totalorder %s1021_s17, %s1021_s17 }
  0x2f   :  { %p1028_p8 = por %p1027_p7, %p1026_p6 }
  0x30   :  { %942 = vmatmul.mubr.msk.f32.gmra.mxu0 %vm81_vm0, %v39_v21  ;;  %946 = vmatmul.mubr.msk.f32.gmra.mxu1 %vm81_vm0, %v39_v21 }
  0x31   :  { %354 = vmatprep.mubr.f32.mxu0 %v1048_v1  ;;  %443 = vmatprep.mubr.f32.mxu1 %v1048_v1  ;;  %p1029_p9 = pnand %p1028_p8, %p1022_p5 }
  0x34   :  { %943 = vmatmul.mubr.msk.f32.gmra.mxu0 %vm81_vm0, %v40_v24  ;;  %947 = vmatmul.mubr.msk.f32.gmra.mxu1 %vm81_vm0, %v40_v24 }
  0x35   :  { %586 = vmatprep.mubr.f32.mxu0 %v1048_v1  ;;  %657 = vmatprep.mubr.f32.mxu1 %v1048_v1 }
  0x9d   :  { %v1146_v36 = vpop.permute.xlu0 %78  ;;  %v1148_v41 = vpop.permute.xlu1 %68 }
  0xa1   :  { %v1150_v44 = vpop.permute.xlu0 %73  ;;  %v1164_v57 = vpop.permute.xlu1 %63 }
  0xd8   :  { %v160_v28 = vpop.f32.mrf.mxu0  ;;  %v249_v29 = vpop.f32.mrf.mxu1 }
  0xd9   :  { %v161_v13 = vadd.f32 %v160_v28, %v1164_v57  ;;  %v250_v14 = vadd.f32 %v249_v29, %v1164_v57 }
  0xda   :  { %v162_v30 = vpop.f32.mrf.mxu0  ;;  %v251_v31 = vpop.f32.mrf.mxu1 }
  0xdb   :  { %v163_v5 = vadd.f32 %v162_v30, %v1164_v57  ;;  %v252_v6 = vadd.f32 %v251_v31, %v1164_v57  ;;  %v450_v25 = vmax.f32 %v161_v13, 0.0  ;;  %v452_v26 = vmax.f32 %v250_v14, 0.0 }
  0xdc   :  { %v166_v32 = vpop.f32.mrf.mxu0  ;;  %v255_v33 = vpop.f32.mrf.mxu1 }
  0xdd   :  { %v167_v62 = vadd.f32 %v166_v32, %v1148_v41  ;;  %v256_v63 = vadd.f32 %v255_v33, %v1148_v41  ;;  %v451_v21 = vmax.f32 %v163_v5, 0.0  ;;  %v453_v22 = vmax.f32 %v252_v6, 0.0  ;;  %v487_v5 = vpop.permute.xlu0 %486 }
  0xde   :  { %v168_v34 = vpop.f32.mrf.mxu0  ;;  %v257_v35 = vpop.f32.mrf.mxu1 }
  0xdf   :  { %v169_v58 = vadd.f32 %v168_v34, %v1148_v41  ;;  %v258_v59 = vadd.f32 %v257_v35, %v1148_v41  ;;  %v458_v17 = vmax.f32 %v167_v62, 0.0  ;;  %v460_v18 = vmax.f32 %v256_v63, 0.0 }
  0xe0   :  { %v172_v37 = vpop.f32.mrf.mxu0  ;;  %v261_v38 = vpop.f32.mrf.mxu1 }
  0xe1   :  { %v173_v55 = vadd.f32 %v172_v37, %v1150_v44  ;;  %v262_v56 = vadd.f32 %v261_v38, %v1150_v44  ;;  %v459_v15 = vmax.f32 %v169_v58, 0.0  ;;  %v461_v16 = vmax.f32 %v258_v59, 0.0 }
  0xe2   :  { %v174_v39 = vpop.f32.mrf.mxu0  ;;  %v263_v40 = vpop.f32.mrf.mxu1 }
  0xe3   :  { %v175_v49 = vadd.f32 %v174_v39, %v1150_v44  ;;  %v264_v50 = vadd.f32 %v263_v40, %v1150_v44  ;;  %v466_v11 = vmax.f32 %v173_v55, 0.0  ;;  %v468_v12 = vmax.f32 %v262_v56, 0.0 }
  0xe4   :  { %v178_v42 = vpop.f32.mrf.mxu0  ;;  %v267_v43 = vpop.f32.mrf.mxu1 }
  0xe5   :  { %v179_v45 = vadd.f32 %v178_v42, %v1146_v36  ;;  %v268_v46 = vadd.f32 %v267_v43, %v1146_v36  ;;  %v467_v7 = vmax.f32 %v175_v49, 0.0  ;;  %v469_v8 = vmax.f32 %v264_v50, 0.0 }
  0xe6   :  { %v180_v47 = vpop.f32.mrf.mxu0  ;;  %v269_v48 = vpop.f32.mrf.mxu1 }
  0xe7   :  { %v181_v51 = vadd.f32 %v180_v47, %v1146_v36  ;;  %v270_v52 = vadd.f32 %v269_v48, %v1146_v36  ;;  %v474_v0 = vmax.f32 %v179_v45, 0.0  ;;  %v476_v2 = vmax.f32 %v268_v46, 0.0 }
  0xe8   :  { %v1158_v53 = vpop.f32.mrf.mxu0  ;;  %v1160_v54 = vpop.f32.mrf.mxu1 }
  0xe9   :  { %v475_v60 = vmax.f32 %v181_v51, 0.0  ;;  %v477_v61 = vmax.f32 %v270_v52, 0.0  ;;  %v339_v56 = vadd.f32 %v1158_v53, %v1164_v57 }
  0xea   :  { %v1170_v3 = vpop.f32.mrf.mxu0  ;;  %v1172_v4 = vpop.f32.mrf.mxu1 }
  0xeb   :  { %948 = vmatprep.subr.msk.mxu0 %vm497_vm1, %v475_v60  ;;  %951 = vmatprep.subr.msk.mxu1 %vm497_vm1, %v477_v61  ;;  %v341_v52 = vadd.f32 %v1170_v3, %v1164_v57  ;;  %v454_v53 = vmax.f32 %v339_v56, 0.0 }
  0xec   :  { %v344_v9 = vpop.f32.mrf.mxu0  ;;  %v433_v10 = vpop.f32.mrf.mxu1  ;;  %949 = vmatpush1.msk.msra.mxu0 %vm497_vm1, %v474_v0  ;;  %952 = vmatpush1.msk.msra.mxu1 %vm497_vm1, %v476_v2 }
  0xed   :  { %548 = vmatprep.subr.mxu0 %v467_v7  ;;  %619 = vmatprep.subr.mxu1 %v469_v8  ;;  %v345_v48 = vadd.f32 %v344_v9, %v1148_v41  ;;  %v434_v49 = vadd.f32 %v433_v10, %v1148_v41  ;;  %v455_v0 = vmax.f32 %v341_v52, 0.0 }
  0xee   :  { %v346_v19 = vpop.f32.mrf.mxu0  ;;  %v435_v20 = vpop.f32.mrf.mxu1  ;;  %549 = vmatpush1.msra.mxu0 %v466_v11  ;;  %620 = vmatpush1.msra.mxu1 %v468_v12 }
  0xef   :  { %550 = vmatprep.subr.mxu0 %v459_v15  ;;  %621 = vmatprep.subr.mxu1 %v461_v16  ;;  %v436_v45 = vadd.f32 %v435_v20, %v1148_v41  ;;  %v462_v62 = vmax.f32 %v345_v48, 0.0  ;;  %v464_v63 = vmax.f32 %v434_v49, 0.0 }
  0xf0   :  { %v350_v23 = vpop.f32.mrf.mxu0  ;;  %v439_v24 = vpop.f32.mrf.mxu1  ;;  %551 = vmatpush1.msra.mxu0 %v458_v17  ;;  %622 = vmatpush1.msra.mxu1 %v460_v18 }
  0xf1   :  { %552 = vmatprep.subr.mxu0 %v451_v21  ;;  %623 = vmatprep.subr.mxu1 %v453_v22  ;;  %v351_v42 = vadd.f32 %v350_v23, %v1150_v44  ;;  %v440_v43 = vadd.f32 %v439_v24, %v1150_v44  ;;  %v465_v61 = vmax.f32 %v436_v45, 0.0 }
  0xf2   :  { %v352_v28 = vpop.f32.mrf.mxu0  ;;  %v441_v29 = vpop.f32.mrf.mxu1  ;;  %553 = vmatpush1.msra.mxu0 %v450_v25  ;;  %624 = vmatpush1.msra.mxu1 %v452_v26 }
  0xf3   :  { %950 = vmatmul.mubr.msk.f32.vlgmr.msra.gmra.mxu0 %vm493_vm2, %v1185_v27  ;;  %953 = vmatmul.mubr.msk.f32.vlgmr.msra.gmra.mxu1 %vm493_vm2, %v1185_v27  ;;  %v353_v37 = vadd.f32 %v352_v28, %v1150_v44  ;;  %v442_v38 = vadd.f32 %v441_v29, %v1150_v44  ;;  %v470_v58 = vmax.f32 %v351_v42, 0.0  ;;  %v472_v59 = vmax.f32 %v440_v43, 0.0 }
  0xf4   :  { %v356_v30 = vpop.f32.mrf.mxu0  ;;  %v445_v31 = vpop.f32.mrf.mxu1  ;;  %728 = vmatprep.mubr.f32.mxu0 %v1048_v1  ;;  %799 = vmatprep.mubr.f32.mxu1 %v1048_v1  ;;  %v347_v1 = vadd.f32 %v346_v19, %v1148_v41  ;;  %v428_v41 = vadd.f32 %v1160_v54, %v1164_v57 }
  0xf5   :  { %v357_v32 = vadd.f32 %v356_v30, %v1146_v36  ;;  %v446_v33 = vadd.f32 %v445_v31, %v1146_v36  ;;  %v471_v55 = vmax.f32 %v353_v37, 0.0  ;;  %v473_v44 = vmax.f32 %v442_v38, 0.0 }
  0xf6   :  { %v358_v34 = vpop.f32.mrf.mxu0  ;;  %v447_v35 = vpop.f32.mrf.mxu1  ;;  %v463_v60 = vmax.f32 %v347_v1, 0.0  ;;  %v456_v54 = vmax.f32 %v428_v41, 0.0  ;;  %v1050_v41 = vmov 1966171168  }
  0xf7   :  { %v359_v39 = vadd.f32 %v358_v34, %v1146_v36  ;;  %v448_v40 = vadd.f32 %v447_v35, %v1146_v36  ;;  %v478_v50 = vmax.f32 %v357_v32, 0.0  ;;  %v480_v51 = vmax.f32 %v446_v33, 0.0 }
  0xf8   :  { %v430_v36 = vadd.f32 %v1172_v4, %v1164_v57  ;;  %v489_v57 = vlaneseq }
  0xf9   :  { %v479_v46 = vmax.f32 %v359_v39, 0.0  ;;  %v481_v47 = vmax.f32 %v448_v40, 0.0 }
  0xfa   :  { %v457_v2 = vmax.f32 %v430_v36, 0.0  ;;  %v1222_v3 = vshrl.u32 %v489_v57, 7  ;;  %vm914_vm3 = vcmp.lt.s32.totalorder %v489_v57, 1000 }
  0xfb   :  { %954 = vmatprep.subr.msk.mxu0 %vm497_vm1, %v479_v46  ;;  %957 = vmatprep.subr.msk.mxu1 %vm497_vm1, %v481_v47 }
  0xfc   :  { %955 = vmatpush1.msk.msra.mxu0 %vm497_vm1, %v478_v50  ;;  %958 = vmatpush1.msk.msra.mxu1 %vm497_vm1, %v480_v51  ;;  %v491_v4 = vsub.s32 0, %v1222_v3 }
  0xfd   :  { %690 = vmatprep.subr.mxu0 %v471_v55  ;;  %761 = vmatprep.subr.mxu1 %v473_v44 }
  0xfe   :  { %691 = vmatpush1.msra.mxu0 %v470_v58  ;;  %762 = vmatpush1.msra.mxu1 %v472_v59  ;;  %v492_v9 = vrot.slane %v487_v5, %v491_v4  ;;  %v867_v58 = vunpack.c.l.s4 %v1050_v41 }
  0xff   :  { %692 = vmatprep.subr.mxu0 %v463_v60  ;;  %763 = vmatprep.subr.mxu1 %v465_v61 }
 0x100   :  { %693 = vmatpush1.msra.mxu0 %v462_v62  ;;  %764 = vmatpush1.msra.mxu1 %v464_v63  ;;  %v868_v60 = vunpack.c.0.s8 %v867_v58 }
 0x101   :  { %694 = vmatprep.subr.mxu0 %v455_v0  ;;  %765 = vmatprep.subr.mxu1 %v457_v2 }
 0x102   :  { %695 = vmatpush1.msra.mxu0 %v454_v53  ;;  %766 = vmatpush1.msra.mxu1 %v456_v54  ;;  %v871_v0 = vsub.s32 %v868_v60, %v1222_v3 }
 0x103   :  { %956 = vmatmul.mubr.msk.f32.vlgmr.msra.gmra.mxu0 %vm493_vm2, %v1185_v27  ;;  %959 = vmatmul.mubr.msk.f32.vlgmr.msra.gmra.mxu1 %vm493_vm2, %v1185_v27 }
 0x1b3   :  { %v588_v6 = vpop.f32.mrf.mxu0  ;;  %v659_v7 = vpop.f32.mrf.mxu1 }
 0x1b4   :  { %v589_v13 = vadd.f32 %v588_v6, %v492_v9  ;;  %v660_v14 = vadd.f32 %v659_v7, %v492_v9 }
 0x1b5   :  { %v590_v8 = vpop.f32.mrf.mxu0  ;;  %v661_v10 = vpop.f32.mrf.mxu1 }
 0x1b6   :  { %v591_v11 = vadd.f32 %v590_v8, %v492_v9  ;;  %v662_v12 = vadd.f32 %v661_v10, %v492_v9  ;;  %v806_v17 = vsub.f32 0.0, %v589_v13  ;;  %v808_v18 = vsub.f32 0.0, %v660_v14 }
 0x1b8   :  { %v807_v15 = vsub.f32 0.0, %v591_v11  ;;  %v809_v16 = vsub.f32 0.0, %v662_v12  ;;  %v814_v21 = vmul.f32 1.442695, %v806_v17  ;;  %v818_v22 = vmul.f32 1.442695, %v808_v18 }
 0x1ba   :  { %v816_v19 = vmul.f32 1.442695, %v807_v15  ;;  %v820_v20 = vmul.f32 1.442695, %v809_v16 }
 0x1bc   :  { %969 = vpow2.f32 %v816_v19 }
 0x1bd   :  { %971 = vpow2.f32 %v820_v20 }
 0x1be   :  { %973 = vpow2.f32 %v814_v21 }
 0x1bf   :  { %975 = vpow2.f32 %v818_v22 }
 0x1c3   :  { %v730_v23 = vpop.f32.mrf.mxu0  ;;  %v801_v24 = vpop.f32.mrf.mxu1 }
 0x1c4   :  { %v731_v25 = vadd.f32 %v730_v23, %v492_v9  ;;  %v802_v26 = vadd.f32 %v801_v24, %v492_v9 }
 0x1c5   :  { %v732_v27 = vpop.f32.mrf.mxu0  ;;  %v803_v28 = vpop.f32.mrf.mxu1 }
 0x1c6   :  { %v810_v29 = vsub.f32 0.0, %v731_v25  ;;  %v733_v30 = vadd.f32 %v732_v27, %v492_v9  ;;  %v804_v31 = vadd.f32 %v803_v28, %v492_v9  ;;  %v812_v32 = vsub.f32 0.0, %v802_v26 }
 0x1c8   :  { %v811_v33 = vsub.f32 0.0, %v733_v30  ;;  %v813_v34 = vsub.f32 0.0, %v804_v31  ;;  %v822_v35 = vmul.f32 1.442695, %v810_v29  ;;  %v826_v37 = vmul.f32 1.442695, %v812_v32 }
 0x1c9   :  { %v970_v40 = vpop.eup %969 }
 0x1ca   :  { %v824_v38 = vmul.f32 1.442695, %v811_v33  ;;  %v828_v39 = vmul.f32 1.442695, %v813_v34  ;;  %977 = vpow2.f32 %v822_v35  ;;  %v972_v42 = vpop.eup %971  ;;  %v831_v45 = vadd.f32 1.0, %v970_v40 }
 0x1cb   :  { %979 = vpow2.f32 %v826_v37  ;;  %v974_v43 = vpop.eup %973  ;;  %v833_v46 = vadd.f32 1.0, %v972_v42 }
 0x1cc   :  { %981 = vpow2.f32 %v824_v38  ;;  %v976_v1 = vpop.eup %975  ;;  %v830_v47 = vadd.f32 1.0, %v974_v43 }
 0x1cd   :  { %983 = vpow2.f32 %v828_v39  ;;  %v832_v48 = vadd.f32 1.0, %v976_v1 }
 0x1ce   :  { %985 = vrcp.f32 %v831_v45 }
 0x1cf   :  { %987 = vrcp.f32 %v833_v46 }
 0x1d0   :  { %989 = vrcp.f32 %v830_v47 }
 0x1d1   :  { %991 = vrcp.f32 %v832_v48 }
 0x1d7   :  { %v978_v49 = vpop.eup %977 }
 0x1d8   :  { %v980_v50 = vpop.eup %979  ;;  %v834_v51 = vadd.f32 1.0, %v978_v49 }
 0x1d9   :  { %v982_v52 = vpop.eup %981  ;;  %v836_v36 = vadd.f32 1.0, %v980_v50 }
 0x1da   :  { %v984_v55 = vpop.eup %983  ;;  %993 = vrcp.f32 %v834_v51  ;;  %v835_v44 = vadd.f32 1.0, %v982_v52 }
 0x1db   :  { %995 = vrcp.f32 %v836_v36  ;;  %v837_v56 = vadd.f32 1.0, %v984_v55  ;;  %v986_v59 = vpop.eup %985 }
 0x1dc   :  { %997 = vrcp.f32 %v835_v44  ;;  %v988_v61 = vpop.eup %987 }
 0x1dd   :  { %999 = vrcp.f32 %v837_v56  ;;  %v990_v62 = vpop.eup %989 }
 0x1de   :  { %v992_v63 = vpop.eup %991  ;;  %v862_v2 = vcombine.low %v990_v62, %v986_v59 }
 0x1df   :  { %v863_v53 = vcombine.low %v992_v63, %v988_v61 }
 0x1e0   :  { %v872_v6 = vrot.slane %v862_v2, %v871_v0 }
 0x1e1   :  { %v879_v7 = vrot.slane %v863_v53, %v871_v0 }
 0x1e3   :  { %v894_v13 = vcombine.low %v872_v6, %v879_v7 }
 0x1e5   :  { %v902_v15 = vrot.slane %v894_v13, %v871_v0 }
 0x1e7   :  { %v994_v54 = vpop.eup %993 }
 0x1e8   :  { %v996_v4 = vpop.eup %995 }
 0x1e9   :  { %v998_v5 = vpop.eup %997 }
 0x1ea   :  { %v1000_v8 = vpop.eup %999  ;;  %v864_v9 = vcombine.low %v994_v54, %v998_v5 }
 0x1eb   :  { %v865_v10 = vcombine.low %v996_v4, %v1000_v8 }
 0x1ec   :  { %v886_v11 = vrot.slane %v864_v9, %v871_v0 }
 0x1ed   :  { %v893_v12 = vrot.slane %v865_v10, %v871_v0 }
 0x1ef   :  { %v895_v14 = vcombine.low %v886_v11, %v893_v12 }
 0x1f1   :  { %v909_v16 = vrot.slane %v895_v14, %v871_v0 }
 0x1f3   :  { %v910_v3 = vcombine.low %v902_v15, %v909_v16 }
 0x1f5   :  { %916 = vst.msk [vmem:[#allocation6] sm:$0xff] %vm914_vm3, %v910_v3 }
 0x1f6   :  { %1032 = shalt.err (!%p1029_p9)
}
 0x1f7   :  { %926 = dma.vmem_to_hbm [thread:$0]  %s924_s16, 128, %s1235_s5, [#allocation5]  }
 0x1f8   :  { %1043 = dma.done.wait [#allocation5], 128  }
 0x1f9   :  { %1044 = vsyncadd [#allocation5], 4294967168 }
 0x1fa   :  { %930 = vsyncpa [#allocation4], 1 }
 0x1fb   :  { %931 = vsyncpa [#allocation5], 1 }

</bundles_post_ra>
